<compile_context>
chip_gen: v7x
topology: tpu7x:2x2x1
jax: 0.10.0
libtpu: 0.0.40
codegen_flags: <defaults>
</compile_context>

<pallas_src>
import functools

import jax
import jax.numpy as jnp
from jax import lax
from jax.experimental import pallas as pl
from jax.experimental.pallas import tpu as pltpu


def _round_up(x, m):
    return (x + m - 1) // m * m


def _center_loss_kernel(labels_ref, x_ref, c_hbm, out_ref, cbuf, sems, *,
                        batch, num_classes, tb):
    """One grid step = one batch tile of `tb` samples.

    labels_ref : (B_pad,) int32, SMEM (scalar prefetch)
    x_ref      : (tb, D) feature tile, VMEM
    c_hbm      : (C, D) centers, left in HBM (memory_space=pl.ANY)
    out_ref    : (1, 1) f32 resident accumulator / final loss
    cbuf       : (tb, D) VMEM scratch for the gathered center rows
    sems       : (tb,) DMA semaphores, one per gathered row
    """
    step = pl.program_id(0)
    nsteps = pl.num_programs(0)
    base = step * tb

    @pl.when(step == 0)
    def _init():
        out_ref[...] = jnp.zeros_like(out_ref)

    # Gather each sample's center row: issue all row DMAs, then wait them all.
    copies = []
    for i in range(tb):
        lbl = labels_ref[base + i]
        cp = pltpu.make_async_copy(
            c_hbm.at[pl.ds(lbl, 1)], cbuf.at[pl.ds(i, 1)], sems.at[i])
        cp.start()
        copies.append(cp)
    for cp in copies:
        cp.wait()

    # sum((x_i - c_{y_i})^2) per row — pure VPU/XLU work, no MXU needed.
    diff = x_ref[...].astype(jnp.float32) - cbuf[...].astype(jnp.float32)
    d = jnp.sum(diff * diff, axis=1, keepdims=True)            # (tb, 1)
    d = jnp.clip(d, 1e-12, 1e12)                               # torch .clamp
    # Mask rows that are batch padding.
    rows = base + lax.broadcasted_iota(jnp.int32, (tb, 1), 0)
    d = jnp.where(rows < batch, d, 0.0)
    out_ref[...] += jnp.sum(d, keepdims=True)

    @pl.when(step == nsteps - 1)
    def _finalize():
        # Masked-out zeros in the reference clamp to 1e-12 each:
        # B*(C-1)*1e-12 in the sum, i.e. (C-1)*1e-12/2 after /B/2.
        clamp_bias = jnp.float32((num_classes - 1) * 1e-12 * 0.5)
        out_ref[...] = out_ref[...] / jnp.float32(2.0 * batch) + clamp_bias


def center_loss(x, labels, centers, *, tile_b=32):
    """x: (B, D) float, labels: (B,) int, centers: (C, D). Returns scalar loss."""
    x = x.astype(centers.dtype)
    B, D = x.shape
    C, Dc = centers.shape
    assert D == Dc, (D, Dc)
    labels = labels.astype(jnp.int32)

    # Batch tile: multiple of 8 sublanes, capped at tile_b; pad batch to tile.
    tb = min(tile_b, _round_up(B, 8))
    b_pad = _round_up(B, tb)
    if b_pad != B:
        x = jnp.pad(x, ((0, b_pad - B), (0, 0)))
        labels = jnp.pad(labels, (0, b_pad - B))     # pad labels -> class 0 (masked)

    kernel = functools.partial(
        _center_loss_kernel, batch=B, num_classes=C, tb=tb)

    grid_spec = pltpu.PrefetchScalarGridSpec(
        num_scalar_prefetch=1,                 # labels land in SMEM
        grid=(b_pad // tb,),
        in_specs=[
            pl.BlockSpec((tb, D), lambda s, lbl: (s, 0)),   # features tile
            pl.BlockSpec(memory_space=pl.ANY),              # centers stay in HBM
        ],
        out_specs=pl.BlockSpec((1, 1), lambda s, lbl: (0, 0)),
        scratch_shapes=[
            pltpu.VMEM((tb, D), centers.dtype),             # gathered center rows
            pltpu.SemaphoreType.DMA((tb,)),                 # one sem per row DMA
        ],
    )

    out = pl.pallas_call(
        kernel,
        grid_spec=grid_spec,
        out_shape=jax.ShapeDtypeStruct((1, 1), jnp.float32),
        compiler_params=pltpu.CompilerParams(
            # Batch axis reduces into the resident (1,1) accumulator.
            dimension_semantics=("arbitrary",),
        ),
    )(labels, x, centers)
    return out[0, 0]


def center_loss_ref(x, labels, centers):
    """Pure-JAX reference mirroring the PyTorch forward exactly."""
    x = x.astype(centers.dtype)
    B = x.shape[0]
    C = centers.shape[0]
    distmat = (jnp.sum(x ** 2, axis=1, keepdims=True)
               + jnp.sum(centers ** 2, axis=1)[None, :]
               - 2.0 * jnp.dot(x, centers.T, precision=lax.Precision.HIGHEST))
    mask = (labels[:, None] == jnp.arange(C)[None, :]).astype(x.dtype)
    dist = jnp.clip(distmat * mask, 1e-12, 1e12)
    return jnp.sum(dist) / B / 2.0


if __name__ == "__main__":
    # Small config consistent with the module (num_classes, feat_dim, batch).
    num_classes, feat_dim, batch = 16, 32, 8
    k_x, k_c, k_l = jax.random.split(jax.random.PRNGKey(0), 3)
    centers = jax.random.normal(k_c, (num_classes, feat_dim), dtype=jnp.float32)
    x = jax.random.normal(k_x, (batch, feat_dim), dtype=jnp.float32)
    labels = jax.random.randint(k_l, (batch,), 0, num_classes, dtype=jnp.int32)

    loss = center_loss(x, labels, centers)
    jax.block_until_ready(loss)
    ref = center_loss_ref(x, labels, centers)
    assert jnp.allclose(loss, ref, rtol=1e-5, atol=1e-4), (loss, ref)

    # Larger-C, ragged-batch config: exercises the HBM gather path, batch
    # tiling (2 grid steps) and padded-row masking.
    num_classes2, feat_dim2, batch2 = 1000, 128, 50
    k_x2, k_c2, k_l2 = jax.random.split(jax.random.PRNGKey(1), 3)
    centers2 = jax.random.normal(k_c2, (num_classes2, feat_dim2), dtype=jnp.float32)
    x2 = jax.random.normal(k_x2, (batch2, feat_dim2), dtype=jnp.float32)
    labels2 = jax.random.randint(k_l2, (batch2,), 0, num_classes2, dtype=jnp.int32)

    loss2 = center_loss(x2, labels2, centers2)
    jax.block_until_ready(loss2)
    ref2 = center_loss_ref(x2, labels2, centers2)
    assert jnp.allclose(loss2, ref2, rtol=1e-5, atol=1e-4), (loss2, ref2)

    print("KERNEL_OK")
</pallas_src>

<mosaic_0001>
module attributes {stable_mosaic.version = 11 : i64} {
  func.func @_center_loss_kernel(%arg0: i32, %arg1: memref<8xi32, #tpu.memory_space<smem>>, %arg2: memref<8x32xf32, #tpu.memory_space<vmem>>, %arg3: memref<16x32xf32, #tpu.memory_space<any>>, %arg4: memref<1x1xf32, #tpu.memory_space<vmem>>, %arg5: memref<8x32xf32, #tpu.memory_space<vmem>>, %arg6: memref<8x!tpu.dma_semaphore, #tpu.memory_space<semaphore_mem>>) attributes {dimension_semantics = [#tpu.dimension_semantics<arbitrary>], iteration_bounds = array<i64: 1>, scalar_prefetch = 1 : i64, scratch_operands = 2 : i64, tpu.core_type = #tpu.core_type<tc>, window_params = [{transform_indices = @transform_0, window_bounds = array<i64: 8, 32>}, {}, {pipeline_mode = #tpu.pipeline_mode<synchronous>, transform_indices = @transform_2, window_bounds = array<i64: 1, 1>}]} {
    %c8_i32 = arith.constant 8 : i32
    %0 = arith.muli %arg0, %c8_i32 : i32
    %c0_i32 = arith.constant 0 : i32
    %1 = arith.cmpi eq, %arg0, %c0_i32 : i32
    %2 = arith.extui %1 : i1 to i32
    %c0_i32_0 = arith.constant 0 : i32
    %3 = arith.cmpi ne, %2, %c0_i32_0 : i32
    scf.if %3 {
      %cst_80 = arith.constant 0.000000e+00 : f32
      %120 = vector.broadcast %cst_80 : f32 to vector<1x1xf32>
      %c0_81 = arith.constant 0 : index
      %c0_82 = arith.constant 0 : index
      %121 = vector.load %arg4[%c0_81, %c0_82] : memref<1x1xf32, #tpu.memory_space<vmem>>, vector<1x1xf32>
      tpu.vector_store %arg4[%c0_81, %c0_82], %120 {strides = array<i32>} : memref<1x1xf32, #tpu.memory_space<vmem>>, vector<1x1xf32>,
    } else {
    }
    %c0_i32_1 = arith.constant 0 : i32
    %4 = arith.addi %0, %c0_i32_1 : i32
    %5 = arith.index_cast %4 : i32 to index
    %6 = memref.load %arg1[%5] : memref<8xi32, #tpu.memory_space<smem>>
    %c0_i32_2 = arith.constant 0 : i32
    %c0_i32_3 = arith.constant 0 : i32
    %7 = tpu.memref_slice %arg3[%6, %c0_i32_3] : memref<16x32xf32, #tpu.memory_space<any>> -> memref<1x32xf32, #tpu.memory_space<any>>
    %c0_i32_4 = arith.constant 0 : i32
    %c0_i32_5 = arith.constant 0 : i32
    %8 = tpu.memref_slice %arg5[%c0_i32_4, %c0_i32_5] : memref<8x32xf32, #tpu.memory_space<vmem>> -> memref<1x32xf32, #tpu.memory_space<vmem>>
    %9 = tpu.memref_slice %arg6[%c0_i32_2] : memref<8x!tpu.dma_semaphore, #tpu.memory_space<semaphore_mem>> -> memref<1x!tpu.dma_semaphore, #tpu.memory_space<semaphore_mem>>
    %10 = tpu.memref_squeeze %9 : memref<1x!tpu.dma_semaphore, #tpu.memory_space<semaphore_mem>> -> memref<!tpu.dma_semaphore, #tpu.memory_space<semaphore_mem>>
    tpu.enqueue_dma source(%7 : memref<1x32xf32, #tpu.memory_space<any>>) target(%8 : memref<1x32xf32, #tpu.memory_space<vmem>>) target_semaphore(%10 : memref<!tpu.dma_semaphore, #tpu.memory_space<semaphore_mem>>)
    %c1_i32 = arith.constant 1 : i32
    %11 = arith.addi %0, %c1_i32 : i32
    %12 = arith.index_cast %11 : i32 to index
    %13 = memref.load %arg1[%12] : memref<8xi32, #tpu.memory_space<smem>>
    %c1_i32_6 = arith.constant 1 : i32
    %c0_i32_7 = arith.constant 0 : i32
    %14 = tpu.memref_slice %arg3[%13, %c0_i32_7] : memref<16x32xf32, #tpu.memory_space<any>> -> memref<1x32xf32, #tpu.memory_space<any>>
    %c1_i32_8 = arith.constant 1 : i32
    %c0_i32_9 = arith.constant 0 : i32
    %15 = tpu.memref_slice %arg5[%c1_i32_8, %c0_i32_9] : memref<8x32xf32, #tpu.memory_space<vmem>> -> memref<1x32xf32, #tpu.memory_space<vmem>>
    %16 = tpu.memref_slice %arg6[%c1_i32_6] : memref<8x!tpu.dma_semaphore, #tpu.memory_space<semaphore_mem>> -> memref<1x!tpu.dma_semaphore, #tpu.memory_space<semaphore_mem>>
    %17 = tpu.memref_squeeze %16 : memref<1x!tpu.dma_semaphore, #tpu.memory_space<semaphore_mem>> -> memref<!tpu.dma_semaphore, #tpu.memory_space<semaphore_mem>>
    tpu.enqueue_dma source(%14 : memref<1x32xf32, #tpu.memory_space<any>>) target(%15 : memref<1x32xf32, #tpu.memory_space<vmem>>) target_semaphore(%17 : memref<!tpu.dma_semaphore, #tpu.memory_space<semaphore_mem>>)
    %c2_i32 = arith.constant 2 : i32
    %18 = arith.addi %0, %c2_i32 : i32
    %19 = arith.index_cast %18 : i32 to index
    %20 = memref.load %arg1[%19] : memref<8xi32, #tpu.memory_space<smem>>
    %c2_i32_10 = arith.constant 2 : i32
    %c0_i32_11 = arith.constant 0 : i32
    %21 = tpu.memref_slice %arg3[%20, %c0_i32_11] : memref<16x32xf32, #tpu.memory_space<any>> -> memref<1x32xf32, #tpu.memory_space<any>>
    %c2_i32_12 = arith.constant 2 : i32
    %c0_i32_13 = arith.constant 0 : i32
    %22 = tpu.memref_slice %arg5[%c2_i32_12, %c0_i32_13] : memref<8x32xf32, #tpu.memory_space<vmem>> -> memref<1x32xf32, #tpu.memory_space<vmem>>
    %23 = tpu.memref_slice %arg6[%c2_i32_10] : memref<8x!tpu.dma_semaphore, #tpu.memory_space<semaphore_mem>> -> memref<1x!tpu.dma_semaphore, #tpu.memory_space<semaphore_mem>>
    %24 = tpu.memref_squeeze %23 : memref<1x!tpu.dma_semaphore, #tpu.memory_space<semaphore_mem>> -> memref<!tpu.dma_semaphore, #tpu.memory_space<semaphore_mem>>
    tpu.enqueue_dma source(%21 : memref<1x32xf32, #tpu.memory_space<any>>) target(%22 : memref<1x32xf32, #tpu.memory_space<vmem>>) target_semaphore(%24 : memref<!tpu.dma_semaphore, #tpu.memory_space<semaphore_mem>>)
    %c3_i32 = arith.constant 3 : i32
    %25 = arith.addi %0, %c3_i32 : i32
    %26 = arith.index_cast %25 : i32 to index
    %27 = memref.load %arg1[%26] : memref<8xi32, #tpu.memory_space<smem>>
    %c3_i32_14 = arith.constant 3 : i32
    %c0_i32_15 = arith.constant 0 : i32
    %28 = tpu.memref_slice %arg3[%27, %c0_i32_15] : memref<16x32xf32, #tpu.memory_space<any>> -> memref<1x32xf32, #tpu.memory_space<any>>
    %c3_i32_16 = arith.constant 3 : i32
    %c0_i32_17 = arith.constant 0 : i32
    %29 = tpu.memref_slice %arg5[%c3_i32_16, %c0_i32_17] : memref<8x32xf32, #tpu.memory_space<vmem>> -> memref<1x32xf32, #tpu.memory_space<vmem>>
    %30 = tpu.memref_slice %arg6[%c3_i32_14] : memref<8x!tpu.dma_semaphore, #tpu.memory_space<semaphore_mem>> -> memref<1x!tpu.dma_semaphore, #tpu.memory_space<semaphore_mem>>
    %31 = tpu.memref_squeeze %30 : memref<1x!tpu.dma_semaphore, #tpu.memory_space<semaphore_mem>> -> memref<!tpu.dma_semaphore, #tpu.memory_space<semaphore_mem>>
    tpu.enqueue_dma source(%28 : memref<1x32xf32, #tpu.memory_space<any>>) target(%29 : memref<1x32xf32, #tpu.memory_space<vmem>>) target_semaphore(%31 : memref<!tpu.dma_semaphore, #tpu.memory_space<semaphore_mem>>)
    %c4_i32 = arith.constant 4 : i32
    %32 = arith.addi %0, %c4_i32 : i32
    %33 = arith.index_cast %32 : i32 to index
    %34 = memref.load %arg1[%33] : memref<8xi32, #tpu.memory_space<smem>>
    %c4_i32_18 = arith.constant 4 : i32
    %c0_i32_19 = arith.constant 0 : i32
    %35 = tpu.memref_slice %arg3[%34, %c0_i32_19] : memref<16x32xf32, #tpu.memory_space<any>> -> memref<1x32xf32, #tpu.memory_space<any>>
    %c4_i32_20 = arith.constant 4 : i32
    %c0_i32_21 = arith.constant 0 : i32
    %36 = tpu.memref_slice %arg5[%c4_i32_20, %c0_i32_21] : memref<8x32xf32, #tpu.memory_space<vmem>> -> memref<1x32xf32, #tpu.memory_space<vmem>>
    %37 = tpu.memref_slice %arg6[%c4_i32_18] : memref<8x!tpu.dma_semaphore, #tpu.memory_space<semaphore_mem>> -> memref<1x!tpu.dma_semaphore, #tpu.memory_space<semaphore_mem>>
    %38 = tpu.memref_squeeze %37 : memref<1x!tpu.dma_semaphore, #tpu.memory_space<semaphore_mem>> -> memref<!tpu.dma_semaphore, #tpu.memory_space<semaphore_mem>>
    tpu.enqueue_dma source(%35 : memref<1x32xf32, #tpu.memory_space<any>>) target(%36 : memref<1x32xf32, #tpu.memory_space<vmem>>) target_semaphore(%38 : memref<!tpu.dma_semaphore, #tpu.memory_space<semaphore_mem>>)
    %c5_i32 = arith.constant 5 : i32
    %39 = arith.addi %0, %c5_i32 : i32
    %40 = arith.index_cast %39 : i32 to index
    %41 = memref.load %arg1[%40] : memref<8xi32, #tpu.memory_space<smem>>
    %c5_i32_22 = arith.constant 5 : i32
    %c0_i32_23 = arith.constant 0 : i32
    %42 = tpu.memref_slice %arg3[%41, %c0_i32_23] : memref<16x32xf32, #tpu.memory_space<any>> -> memref<1x32xf32, #tpu.memory_space<any>>
    %c5_i32_24 = arith.constant 5 : i32
    %c0_i32_25 = arith.constant 0 : i32
    %43 = tpu.memref_slice %arg5[%c5_i32_24, %c0_i32_25] : memref<8x32xf32, #tpu.memory_space<vmem>> -> memref<1x32xf32, #tpu.memory_space<vmem>>
    %44 = tpu.memref_slice %arg6[%c5_i32_22] : memref<8x!tpu.dma_semaphore, #tpu.memory_space<semaphore_mem>> -> memref<1x!tpu.dma_semaphore, #tpu.memory_space<semaphore_mem>>
    %45 = tpu.memref_squeeze %44 : memref<1x!tpu.dma_semaphore, #tpu.memory_space<semaphore_mem>> -> memref<!tpu.dma_semaphore, #tpu.memory_space<semaphore_mem>>
    tpu.enqueue_dma source(%42 : memref<1x32xf32, #tpu.memory_space<any>>) target(%43 : memref<1x32xf32, #tpu.memory_space<vmem>>) target_semaphore(%45 : memref<!tpu.dma_semaphore, #tpu.memory_space<semaphore_mem>>)
    %c6_i32 = arith.constant 6 : i32
    %46 = arith.addi %0, %c6_i32 : i32
    %47 = arith.index_cast %46 : i32 to index
    %48 = memref.load %arg1[%47] : memref<8xi32, #tpu.memory_space<smem>>
    %c6_i32_26 = arith.constant 6 : i32
    %c0_i32_27 = arith.constant 0 : i32
    %49 = tpu.memref_slice %arg3[%48, %c0_i32_27] : memref<16x32xf32, #tpu.memory_space<any>> -> memref<1x32xf32, #tpu.memory_space<any>>
    %c6_i32_28 = arith.constant 6 : i32
    %c0_i32_29 = arith.constant 0 : i32
    %50 = tpu.memref_slice %arg5[%c6_i32_28, %c0_i32_29] : memref<8x32xf32, #tpu.memory_space<vmem>> -> memref<1x32xf32, #tpu.memory_space<vmem>>
    %51 = tpu.memref_slice %arg6[%c6_i32_26] : memref<8x!tpu.dma_semaphore, #tpu.memory_space<semaphore_mem>> -> memref<1x!tpu.dma_semaphore, #tpu.memory_space<semaphore_mem>>
    %52 = tpu.memref_squeeze %51 : memref<1x!tpu.dma_semaphore, #tpu.memory_space<semaphore_mem>> -> memref<!tpu.dma_semaphore, #tpu.memory_space<semaphore_mem>>
    tpu.enqueue_dma source(%49 : memref<1x32xf32, #tpu.memory_space<any>>) target(%50 : memref<1x32xf32, #tpu.memory_space<vmem>>) target_semaphore(%52 : memref<!tpu.dma_semaphore, #tpu.memory_space<semaphore_mem>>)
    %c7_i32 = arith.constant 7 : i32
    %53 = arith.addi %0, %c7_i32 : i32
    %54 = arith.index_cast %53 : i32 to index
    %55 = memref.load %arg1[%54] : memref<8xi32, #tpu.memory_space<smem>>
    %c7_i32_30 = arith.constant 7 : i32
    %c0_i32_31 = arith.constant 0 : i32
    %56 = tpu.memref_slice %arg3[%55, %c0_i32_31] : memref<16x32xf32, #tpu.memory_space<any>> -> memref<1x32xf32, #tpu.memory_space<any>>
    %c7_i32_32 = arith.constant 7 : i32
    %c0_i32_33 = arith.constant 0 : i32
    %57 = tpu.memref_slice %arg5[%c7_i32_32, %c0_i32_33] : memref<8x32xf32, #tpu.memory_space<vmem>> -> memref<1x32xf32, #tpu.memory_space<vmem>>
    %58 = tpu.memref_slice %arg6[%c7_i32_30] : memref<8x!tpu.dma_semaphore, #tpu.memory_space<semaphore_mem>> -> memref<1x!tpu.dma_semaphore, #tpu.memory_space<semaphore_mem>>
    %59 = tpu.memref_squeeze %58 : memref<1x!tpu.dma_semaphore, #tpu.memory_space<semaphore_mem>> -> memref<!tpu.dma_semaphore, #tpu.memory_space<semaphore_mem>>
    tpu.enqueue_dma source(%56 : memref<1x32xf32, #tpu.memory_space<any>>) target(%57 : memref<1x32xf32, #tpu.memory_space<vmem>>) target_semaphore(%59 : memref<!tpu.dma_semaphore, #tpu.memory_space<semaphore_mem>>)
    %c0_i32_34 = arith.constant 0 : i32
    %c0_i32_35 = arith.constant 0 : i32
    %60 = tpu.memref_slice %arg3[%6, %c0_i32_35] : memref<16x32xf32, #tpu.memory_space<any>> -> memref<1x32xf32, #tpu.memory_space<any>>
    %c0_i32_36 = arith.constant 0 : i32
    %c0_i32_37 = arith.constant 0 : i32
    %61 = tpu.memref_slice %arg5[%c0_i32_36, %c0_i32_37] : memref<8x32xf32, #tpu.memory_space<vmem>> -> memref<1x32xf32, #tpu.memory_space<vmem>>
    %62 = tpu.memref_slice %arg6[%c0_i32_34] : memref<8x!tpu.dma_semaphore, #tpu.memory_space<semaphore_mem>> -> memref<1x!tpu.dma_semaphore, #tpu.memory_space<semaphore_mem>>
    %63 = tpu.memref_squeeze %62 : memref<1x!tpu.dma_semaphore, #tpu.memory_space<semaphore_mem>> -> memref<!tpu.dma_semaphore, #tpu.memory_space<semaphore_mem>>
    tpu.wait_dma2 semaphore(%63 : memref<!tpu.dma_semaphore, #tpu.memory_space<semaphore_mem>>) src(%60 : memref<1x32xf32, #tpu.memory_space<any>>) dst(%61 : memref<1x32xf32, #tpu.memory_space<vmem>>)
    %c1_i32_38 = arith.constant 1 : i32
    %c0_i32_39 = arith.constant 0 : i32
    %64 = tpu.memref_slice %arg3[%13, %c0_i32_39] : memref<16x32xf32, #tpu.memory_space<any>> -> memref<1x32xf32, #tpu.memory_space<any>>
    %c1_i32_40 = arith.constant 1 : i32
    %c0_i32_41 = arith.constant 0 : i32
    %65 = tpu.memref_slice %arg5[%c1_i32_40, %c0_i32_41] : memref<8x32xf32, #tpu.memory_space<vmem>> -> memref<1x32xf32, #tpu.memory_space<vmem>>
    %66 = tpu.memref_slice %arg6[%c1_i32_38] : memref<8x!tpu.dma_semaphore, #tpu.memory_space<semaphore_mem>> -> memref<1x!tpu.dma_semaphore, #tpu.memory_space<semaphore_mem>>
    %67 = tpu.memref_squeeze %66 : memref<1x!tpu.dma_semaphore, #tpu.memory_space<semaphore_mem>> -> memref<!tpu.dma_semaphore, #tpu.memory_space<semaphore_mem>>
    tpu.wait_dma2 semaphore(%67 : memref<!tpu.dma_semaphore, #tpu.memory_space<semaphore_mem>>) src(%64 : memref<1x32xf32, #tpu.memory_space<any>>) dst(%65 : memref<1x32xf32, #tpu.memory_space<vmem>>)
    %c2_i32_42 = arith.constant 2 : i32
    %c0_i32_43 = arith.constant 0 : i32
    %68 = tpu.memref_slice %arg3[%20, %c0_i32_43] : memref<16x32xf32, #tpu.memory_space<any>> -> memref<1x32xf32, #tpu.memory_space<any>>
    %c2_i32_44 = arith.constant 2 : i32
    %c0_i32_45 = arith.constant 0 : i32
    %69 = tpu.memref_slice %arg5[%c2_i32_44, %c0_i32_45] : memref<8x32xf32, #tpu.memory_space<vmem>> -> memref<1x32xf32, #tpu.memory_space<vmem>>
    %70 = tpu.memref_slice %arg6[%c2_i32_42] : memref<8x!tpu.dma_semaphore, #tpu.memory_space<semaphore_mem>> -> memref<1x!tpu.dma_semaphore, #tpu.memory_space<semaphore_mem>>
    %71 = tpu.memref_squeeze %70 : memref<1x!tpu.dma_semaphore, #tpu.memory_space<semaphore_mem>> -> memref<!tpu.dma_semaphore, #tpu.memory_space<semaphore_mem>>
    tpu.wait_dma2 semaphore(%71 : memref<!tpu.dma_semaphore, #tpu.memory_space<semaphore_mem>>) src(%68 : memref<1x32xf32, #tpu.memory_space<any>>) dst(%69 : memref<1x32xf32, #tpu.memory_space<vmem>>)
    %c3_i32_46 = arith.constant 3 : i32
    %c0_i32_47 = arith.constant 0 : i32
    %72 = tpu.memref_slice %arg3[%27, %c0_i32_47] : memref<16x32xf32, #tpu.memory_space<any>> -> memref<1x32xf32, #tpu.memory_space<any>>
    %c3_i32_48 = arith.constant 3 : i32
    %c0_i32_49 = arith.constant 0 : i32
    %73 = tpu.memref_slice %arg5[%c3_i32_48, %c0_i32_49] : memref<8x32xf32, #tpu.memory_space<vmem>> -> memref<1x32xf32, #tpu.memory_space<vmem>>
    %74 = tpu.memref_slice %arg6[%c3_i32_46] : memref<8x!tpu.dma_semaphore, #tpu.memory_space<semaphore_mem>> -> memref<1x!tpu.dma_semaphore, #tpu.memory_space<semaphore_mem>>
    %75 = tpu.memref_squeeze %74 : memref<1x!tpu.dma_semaphore, #tpu.memory_space<semaphore_mem>> -> memref<!tpu.dma_semaphore, #tpu.memory_space<semaphore_mem>>
    tpu.wait_dma2 semaphore(%75 : memref<!tpu.dma_semaphore, #tpu.memory_space<semaphore_mem>>) src(%72 : memref<1x32xf32, #tpu.memory_space<any>>) dst(%73 : memref<1x32xf32, #tpu.memory_space<vmem>>)
    %c4_i32_50 = arith.constant 4 : i32
    %c0_i32_51 = arith.constant 0 : i32
    %76 = tpu.memref_slice %arg3[%34, %c0_i32_51] : memref<16x32xf32, #tpu.memory_space<any>> -> memref<1x32xf32, #tpu.memory_space<any>>
    %c4_i32_52 = arith.constant 4 : i32
    %c0_i32_53 = arith.constant 0 : i32
    %77 = tpu.memref_slice %arg5[%c4_i32_52, %c0_i32_53] : memref<8x32xf32, #tpu.memory_space<vmem>> -> memref<1x32xf32, #tpu.memory_space<vmem>>
    %78 = tpu.memref_slice %arg6[%c4_i32_50] : memref<8x!tpu.dma_semaphore, #tpu.memory_space<semaphore_mem>> -> memref<1x!tpu.dma_semaphore, #tpu.memory_space<semaphore_mem>>
    %79 = tpu.memref_squeeze %78 : memref<1x!tpu.dma_semaphore, #tpu.memory_space<semaphore_mem>> -> memref<!tpu.dma_semaphore, #tpu.memory_space<semaphore_mem>>
    tpu.wait_dma2 semaphore(%79 : memref<!tpu.dma_semaphore, #tpu.memory_space<semaphore_mem>>) src(%76 : memref<1x32xf32, #tpu.memory_space<any>>) dst(%77 : memref<1x32xf32, #tpu.memory_space<vmem>>)
    %c5_i32_54 = arith.constant 5 : i32
    %c0_i32_55 = arith.constant 0 : i32
    %80 = tpu.memref_slice %arg3[%41, %c0_i32_55] : memref<16x32xf32, #tpu.memory_space<any>> -> memref<1x32xf32, #tpu.memory_space<any>>
    %c5_i32_56 = arith.constant 5 : i32
    %c0_i32_57 = arith.constant 0 : i32
    %81 = tpu.memref_slice %arg5[%c5_i32_56, %c0_i32_57] : memref<8x32xf32, #tpu.memory_space<vmem>> -> memref<1x32xf32, #tpu.memory_space<vmem>>
    %82 = tpu.memref_slice %arg6[%c5_i32_54] : memref<8x!tpu.dma_semaphore, #tpu.memory_space<semaphore_mem>> -> memref<1x!tpu.dma_semaphore, #tpu.memory_space<semaphore_mem>>
    %83 = tpu.memref_squeeze %82 : memref<1x!tpu.dma_semaphore, #tpu.memory_space<semaphore_mem>> -> memref<!tpu.dma_semaphore, #tpu.memory_space<semaphore_mem>>
    tpu.wait_dma2 semaphore(%83 : memref<!tpu.dma_semaphore, #tpu.memory_space<semaphore_mem>>) src(%80 : memref<1x32xf32, #tpu.memory_space<any>>) dst(%81 : memref<1x32xf32, #tpu.memory_space<vmem>>)
    %c6_i32_58 = arith.constant 6 : i32
    %c0_i32_59 = arith.constant 0 : i32
    %84 = tpu.memref_slice %arg3[%48, %c0_i32_59] : memref<16x32xf32, #tpu.memory_space<any>> -> memref<1x32xf32, #tpu.memory_space<any>>
    %c6_i32_60 = arith.constant 6 : i32
    %c0_i32_61 = arith.constant 0 : i32
    %85 = tpu.memref_slice %arg5[%c6_i32_60, %c0_i32_61] : memref<8x32xf32, #tpu.memory_space<vmem>> -> memref<1x32xf32, #tpu.memory_space<vmem>>
    %86 = tpu.memref_slice %arg6[%c6_i32_58] : memref<8x!tpu.dma_semaphore, #tpu.memory_space<semaphore_mem>> -> memref<1x!tpu.dma_semaphore, #tpu.memory_space<semaphore_mem>>
    %87 = tpu.memref_squeeze %86 : memref<1x!tpu.dma_semaphore, #tpu.memory_space<semaphore_mem>> -> memref<!tpu.dma_semaphore, #tpu.memory_space<semaphore_mem>>
    tpu.wait_dma2 semaphore(%87 : memref<!tpu.dma_semaphore, #tpu.memory_space<semaphore_mem>>) src(%84 : memref<1x32xf32, #tpu.memory_space<any>>) dst(%85 : memref<1x32xf32, #tpu.memory_space<vmem>>)
    %c7_i32_62 = arith.constant 7 : i32
    %c0_i32_63 = arith.constant 0 : i32
    %88 = tpu.memref_slice %arg3[%55, %c0_i32_63] : memref<16x32xf32, #tpu.memory_space<any>> -> memref<1x32xf32, #tpu.memory_space<any>>
    %c7_i32_64 = arith.constant 7 : i32
    %c0_i32_65 = arith.constant 0 : i32
    %89 = tpu.memref_slice %arg5[%c7_i32_64, %c0_i32_65] : memref<8x32xf32, #tpu.memory_space<vmem>> -> memref<1x32xf32, #tpu.memory_space<vmem>>
    %90 = tpu.memref_slice %arg6[%c7_i32_62] : memref<8x!tpu.dma_semaphore, #tpu.memory_space<semaphore_mem>> -> memref<1x!tpu.dma_semaphore, #tpu.memory_space<semaphore_mem>>
    %91 = tpu.memref_squeeze %90 : memref<1x!tpu.dma_semaphore, #tpu.memory_space<semaphore_mem>> -> memref<!tpu.dma_semaphore, #tpu.memory_space<semaphore_mem>>
    tpu.wait_dma2 semaphore(%91 : memref<!tpu.dma_semaphore, #tpu.memory_space<semaphore_mem>>) src(%88 : memref<1x32xf32, #tpu.memory_space<any>>) dst(%89 : memref<1x32xf32, #tpu.memory_space<vmem>>)
    %c0 = arith.constant 0 : index
    %c0_66 = arith.constant 0 : index
    %92 = vector.load %arg2[%c0, %c0_66] : memref<8x32xf32, #tpu.memory_space<vmem>>, vector<8x32xf32>
    %c0_67 = arith.constant 0 : index
    %c0_68 = arith.constant 0 : index
    %93 = vector.load %arg5[%c0_67, %c0_68] : memref<8x32xf32, #tpu.memory_space<vmem>>, vector<8x32xf32>
    %94 = arith.subf %92, %93 : vector<8x32xf32>
    %95 = arith.mulf %94, %94 : vector<8x32xf32>
    %cst = arith.constant dense<0.000000e+00> : vector<8xf32>
    %96 = vector.multi_reduction <add>, %95, %cst [1] : vector<8x32xf32> to vector<8xf32>
    %97 = vector.shape_cast %96 : vector<8xf32> to vector<8x1xf32>
    %cst_69 = arith.constant 9.99999996E-13 : f32
    %cst_70 = arith.constant 9.99999995E+11 : f32
    %98 = vector.broadcast %cst_69 : f32 to vector<8x1xf32>
    %99 = arith.maximumf %98, %97 : vector<8x1xf32>
    %100 = vector.broadcast %cst_70 : f32 to vector<8x1xf32>
    %101 = arith.minimumf %100, %99 : vector<8x1xf32>
    %102 = tpu.iota {dimensions = array<i32: 0>} : vector<8x1xi32>
    %103 = vector.broadcast %0 : i32 to vector<8x1xi32>
    %104 = arith.addi %103, %102 : vector<8x1xi32>
    %c8_i32_71 = arith.constant 8 : i32
    %105 = vector.broadcast %c8_i32_71 : i32 to vector<8x1xi32>
    %106 = arith.cmpi slt, %104, %105 : vector<8x1xi32>
    %cst_72 = arith.constant 0.000000e+00 : f32
    %107 = vector.broadcast %cst_72 : f32 to vector<8x1xf32>
    %108 = arith.select %106, %101, %107 : vector<8x1xi1>, vector<8x1xf32>
    %c0_73 = arith.constant 0 : index
    %c0_74 = arith.constant 0 : index
    %109 = vector.load %arg4[%c0_73, %c0_74] : memref<1x1xf32, #tpu.memory_space<vmem>>, vector<1x1xf32>
    %110 = vector.shape_cast %108 : vector<8x1xf32> to vector<1x8x1xf32>
    %cst_75 = arith.constant dense<0.000000e+00> : vector<1xf32>
    %111 = vector.multi_reduction <add>, %110, %cst_75 [1, 2] : vector<1x8x1xf32> to vector<1xf32>
    %112 = vector.shape_cast %111 : vector<1xf32> to vector<1x1x1xf32>
    %113 = vector.extract %112[0, 0, 0] : f32 from vector<1x1x1xf32>
    %114 = vector.broadcast %113 : f32 to vector<1x1xf32>
    %115 = arith.addf %109, %114 : vector<1x1xf32>
    %c0_76 = arith.constant 0 : index
    %c0_77 = arith.constant 0 : index
    %116 = vector.load %arg4[%c0_76, %c0_77] : memref<1x1xf32, #tpu.memory_space<vmem>>, vector<1x1xf32>
    tpu.vector_store %arg4[%c0_76, %c0_77], %115 {strides = array<i32>} : memref<1x1xf32, #tpu.memory_space<vmem>>, vector<1x1xf32>,
    %c0_i32_78 = arith.constant 0 : i32
    %117 = arith.cmpi eq, %arg0, %c0_i32_78 : i32
    %118 = arith.extui %117 : i1 to i32
    %c0_i32_79 = arith.constant 0 : i32
    %119 = arith.cmpi ne, %118, %c0_i32_79 : i32
    scf.if %119 {
      %c0_80 = arith.constant 0 : index
      %c0_81 = arith.constant 0 : index
      %120 = vector.load %arg4[%c0_80, %c0_81] : memref<1x1xf32, #tpu.memory_space<vmem>>, vector<1x1xf32>
      %cst_82 = arith.constant 1.600000e+01 : f32
      %121 = vector.broadcast %cst_82 : f32 to vector<1x1xf32>
      %122 = arith.divf %120, %121 : vector<1x1xf32>
      %cst_83 = arith.constant 7.49999975E-12 : f32
      %123 = vector.broadcast %cst_83 : f32 to vector<1x1xf32>
      %124 = arith.addf %122, %123 : vector<1x1xf32>
      %c0_84 = arith.constant 0 : index
      %c0_85 = arith.constant 0 : index
      %125 = vector.load %arg4[%c0_84, %c0_85] : memref<1x1xf32, #tpu.memory_space<vmem>>, vector<1x1xf32>
      tpu.vector_store %arg4[%c0_84, %c0_85], %124 {strides = array<i32>} : memref<1x1xf32, #tpu.memory_space<vmem>>, vector<1x1xf32>,
    } else {
    }
    return
  }
  func.func @transform_0(%arg0: i32, %arg1: memref<8xi32, #tpu.memory_space<smem>>) -> (i32, i32) {
    %c0_i32 = arith.constant 0 : i32
    %c0_i32_0 = arith.constant 0 : i32
    return %arg0, %c0_i32 : i32, i32
  }
  func.func @transform_2(%arg0: i32, %arg1: memref<8xi32, #tpu.memory_space<smem>>) -> (i32, i32) {
    %c0_i32 = arith.constant 0 : i32
    %c0_i32_0 = arith.constant 0 : i32
    %c0_i32_1 = arith.constant 0 : i32
    return %c0_i32, %c0_i32_0 : i32, i32
  }
}

</mosaic_0001>

<bundles_post_ra>
// kernel: tpu_custom_call.1
= control target key start
LH: loop header
LB: loop body
LE: loop exit
PB: predicated region body
PF: predicated region fallthrough
CT: control target
= control target key end

     0   :  { %s817_s0 = inlined_call_operand.hbm [shape: s32[8], index: 0, kind: input, shape index: {}]   ;;  %s818_s1 = inlined_call_operand.hbm [shape: f32[8,32], index: 1, kind: input, shape index: {}]   ;;  %s819_s2 = inlined_call_operand.hbm [shape: f32[16,32], index: 2, kind: input, shape index: {}]   ;;  %s820_s3 = inlined_call_operand.hbm [shape: f32[1,1], index: 3, kind: output, shape index: {}]  }
   0x1   :  { %s347_s14 = scalar_lea.hbm %s817_s0, 16 }
   0x2   :  { %p348_p0 = scmp.ne.s32.totalorder %s817_s0, %s347_s14  ;;  %p351_p1 = scmp.lt.u32.totalorder %s347_s14, %s817_s0 }
   0x4   :  { %p353_p2 = pnand %p351_p1, %p348_p0 }
   0x6   :  { %356 = shalt.err (!%p353_p2)  }
   0x7   :  { %s615_s19 = smov [#allocation5]  }
   0x8   :  { %9 = dma.hbm_to_smem %s817_s0, 16, %s615_s19, [#allocation4] }
   0x9   :  { %593 = dma.done.wait [#allocation4], 16 }
   0xa   :  { %594 = vsyncadd [#allocation4], 4294967280 }
   0xb   :  { %11 = sfence }
   0xc   :  { %12 = vsyncpa [#allocation7], 0 }
   0xd   :  { %13 = vsyncpa [#allocation8], 0  ;;  %s616_s22 = smov [#allocation6]   ;;  %s357_s26 = scalar_lea.hbm %s818_s1, 128 }
   0xe   :  { %s20_s23 = sshll.u32 %s616_s22, 4  ;;  %p358_p3 = scmp.ne.s32.totalorder %s818_s1, %s357_s26  ;;  %s21_s23 = int_to_ptr.vmem [resolvable:$true] %s20_s23 }
   0xf   :  { %p361_p4 = scmp.lt.u32.totalorder %s357_s26, %s818_s1 }
  0x11   :  { %p363_p5 = pnand %p361_p4, %p358_p3 }
  0x13   :  { %366 = shalt.err (!%p363_p5)
}
  0x14   :  { %s367_s0 = scalar_lea.vmem %s21_s23, 128  ;;  %p372_p7 = scmp.lt.s32.totalorder %s21_s23, %s21_s23 }
  0x15   :  { %p368_p6 = scmp.ne.s32.totalorder %s21_s23, %s367_s0  ;;  %p373_p8 = scmp.lt.s32.totalorder %s367_s0, %s367_s0 }
  0x17   :  { %p374_p9 = por %p373_p8, %p372_p7 }
  0x19   :  { %p375_p10 = pnand %p374_p9, %p368_p6 }
  0x1b   :  { %378 = shalt.err (!%p375_p10)
}
  0x1c   :  { %23 = dma.hbm_to_vmem [thread:$0]  %s818_s1, 128, %s21_s23, [#allocation7]  }
  0x1d   :  { %595 = dma.done.wait [#allocation7], 128  }
  0x1e   :  { %596 = vsyncadd [#allocation7], 4294967168  ;;  %vm32_vm0 = vcmask 0   ;;  %s34_s6 = sld [smem:[#allocation5]]  ;;  %s617_s7 = smov [#allocation2]   ;;  %v618_v0 = vmov 0.0  }
  0x1f   :  { %s44_s8 = sshll.u32 %s617_s7, 4  ;;  %33 = vst.msk [vmem:[#allocation9] sm:$0x1] %vm32_vm0, %v618_v0  ;;  %s674_s9 = sld [smem:[#allocation5 + $0x1]]  ;;  %s672_s8 = int_to_ptr.vmem [resolvable:$true] %s44_s8 }
  0x20   :  { %s619_s10 = smov [#allocation2 + $0x1]   ;;  %s676_s12 = sld [smem:[#allocation5 + $0x2]] }
  0x21   :  { %s61_s11 = sshll.u32 %s619_s10, 4  ;;  %s620_s1 = smov [#allocation2 + $0x2]   ;;  %s678_s11 = int_to_ptr.vmem [resolvable:$true] %s61_s11 }
  0x22   :  { %s78_s13 = sshll.u32 %s620_s1, 4  ;;  %s680_s14 = sld [smem:[#allocation5 + $0x3]]  ;;  %s682_s13 = int_to_ptr.vmem [resolvable:$true] %s78_s13 }
  0x23   :  { %s621_s16 = smov [#allocation2 + $0x3]   ;;  %s693_s25 = scalar_lea.hbm %s819_s2, 256 }
  0x24   :  { %s310_s15 = sshll.u32 %s34_s6, 4  ;;  %s684_s17 = sshll.u32 %s621_s16, 4  ;;  %s96_s17 = int_to_ptr.vmem [resolvable:$true] %s684_s17 }
  0x25   :  { %s36_s20 = scalar_lea.hbm %s819_s2, %s310_s15  ;;  %s312_s21 = sshll.u32 %s674_s9, 4 }
  0x26   :  { %s379_s22 = scalar_lea.hbm %s36_s20, 16  ;;  %p382_p12 = scmp.lt.u32.totalorder %s36_s20, %s819_s2 }
  0x27   :  { %p380_p11 = scmp.ne.s32.totalorder %s36_s20, %s379_s22  ;;  %p383_p13 = scmp.lt.u32.totalorder %s693_s25, %s379_s22 }
  0x28   :  { %p385_p1 = scmp.lt.u32.totalorder %s379_s22, %s36_s20 }
  0x29   :  { %p384_p0 = por %p383_p13, %p382_p12 }
  0x2b   :  { %p386_p2 = por %p385_p1, %p384_p0 }
  0x2d   :  { %p387_p3 = pnand %p386_p2, %p380_p11 }
  0x2f   :  { %390 = shalt.err (!%p387_p3)  }
  0x30   :  { %s391_s28 = scalar_lea.vmem %s672_s8, 16  ;;  %s702_s29 = scalar_lea.vmem %s672_s8, 128 }
  0x31   :  { %p392_p4 = scmp.ne.s32.totalorder %s672_s8, %s391_s28  ;;  %p396_p5 = scmp.lt.s32.totalorder %s672_s8, %s672_s8 }
  0x32   :  { %p397_p6 = scmp.lt.s32.totalorder %s702_s29, %s391_s28 }
  0x34   :  { %p398_p7 = por %p397_p6, %p396_p5 }
  0x36   :  { %p399_p8 = pnand %p398_p7, %p392_p4 }
  0x38   :  { %402 = shalt.err (!%p399_p8)  }
  0x39   :  { %47 = dma.hbm_to_vmem [thread:$0]  %s36_s20, 16, %s672_s8, [#allocation3] }
  0x3a   :  { %s51_s4 = scalar_lea.hbm %s819_s2, %s312_s21  ;;  %s314_s5 = sshll.u32 %s676_s12, 4 }
  0x3b   :  { %s403_s6 = scalar_lea.hbm %s51_s4, 16  ;;  %p406_p10 = scmp.lt.u32.totalorder %s51_s4, %s819_s2 }
  0x3c   :  { %p404_p9 = scmp.ne.s32.totalorder %s51_s4, %s403_s6  ;;  %p407_p11 = scmp.lt.u32.totalorder %s693_s25, %s403_s6 }
  0x3d   :  { %p409_p13 = scmp.lt.u32.totalorder %s403_s6, %s51_s4 }
  0x3e   :  { %p408_p12 = por %p407_p11, %p406_p10 }
  0x40   :  { %p410_p0 = por %p409_p13, %p408_p12 }
  0x42   :  { %p411_p1 = pnand %p410_p0, %p404_p9 }
  0x44   :  { %414 = shalt.err (!%p411_p1)  }
  0x45   :  { %s415_s10 = scalar_lea.vmem %s678_s11, 16  ;;  %p420_p3 = scmp.lt.s32.totalorder %s678_s11, %s672_s8 }
  0x46   :  { %p416_p2 = scmp.ne.s32.totalorder %s678_s11, %s415_s10  ;;  %p421_p4 = scmp.lt.s32.totalorder %s702_s29, %s415_s10 }
  0x48   :  { %p422_p5 = por %p421_p4, %p420_p3 }
  0x4a   :  { %p423_p6 = pnand %p422_p5, %p416_p2 }
  0x4c   :  { %426 = shalt.err (!%p423_p6)  }
  0x4d   :  { %64 = dma.hbm_to_vmem [thread:$0]  %s51_s4, 16, %s678_s11, [#allocation3 + $0x1] }
  0x4e   :  { %s68_s15 = scalar_lea.hbm %s819_s2, %s314_s5  ;;  %s316_s16 = sshll.u32 %s680_s14, 4 }
  0x4f   :  { %s427_s18 = scalar_lea.hbm %s68_s15, 16  ;;  %p430_p8 = scmp.lt.u32.totalorder %s68_s15, %s819_s2 }
  0x50   :  { %p428_p7 = scmp.ne.s32.totalorder %s68_s15, %s427_s18  ;;  %p431_p9 = scmp.lt.u32.totalorder %s693_s25, %s427_s18 }
  0x51   :  { %p433_p11 = scmp.lt.u32.totalorder %s427_s18, %s68_s15 }
  0x52   :  { %p432_p10 = por %p431_p9, %p430_p8 }
  0x54   :  { %p434_p12 = por %p433_p11, %p432_p10 }
  0x56   :  { %p435_p13 = pnand %p434_p12, %p428_p7 }
  0x58   :  { %438 = shalt.err (!%p435_p13)  }
  0x59   :  { %s439_s11 = scalar_lea.vmem %s682_s13, 16  ;;  %p444_p1 = scmp.lt.s32.totalorder %s682_s13, %s672_s8 }
  0x5a   :  { %p440_p0 = scmp.ne.s32.totalorder %s682_s13, %s439_s11  ;;  %p445_p2 = scmp.lt.s32.totalorder %s702_s29, %s439_s11 }
  0x5c   :  { %p446_p3 = por %p445_p2, %p444_p1 }
  0x5e   :  { %p447_p4 = pnand %p446_p3, %p440_p0 }
  0x60   :  { %450 = shalt.err (!%p447_p4)  }
  0x61   :  { %81 = dma.hbm_to_vmem [thread:$0]  %s68_s15, 16, %s682_s13, [#allocation3 + $0x2] }
  0x62   :  { %s85_s22 = scalar_lea.hbm %s819_s2, %s316_s16 }
  0x63   :  { %s451_s23 = scalar_lea.hbm %s85_s22, 16  ;;  %p454_p6 = scmp.lt.u32.totalorder %s85_s22, %s819_s2 }
  0x64   :  { %p452_p5 = scmp.ne.s32.totalorder %s85_s22, %s451_s23  ;;  %p455_p7 = scmp.lt.u32.totalorder %s693_s25, %s451_s23 }
  0x65   :  { %p457_p9 = scmp.lt.u32.totalorder %s451_s23, %s85_s22 }
  0x66   :  { %p456_p8 = por %p455_p7, %p454_p6 }
  0x68   :  { %p458_p10 = por %p457_p9, %p456_p8 }
  0x6a   :  { %p459_p11 = pnand %p458_p10, %p452_p5 }
  0x6c   :  { %462 = shalt.err (!%p459_p11)  }
  0x6d   :  { %s463_s27 = scalar_lea.vmem %s96_s17, 16  ;;  %p468_p13 = scmp.lt.s32.totalorder %s96_s17, %s672_s8 }
  0x6e   :  { %p464_p12 = scmp.ne.s32.totalorder %s96_s17, %s463_s27  ;;  %p469_p0 = scmp.lt.s32.totalorder %s702_s29, %s463_s27 }
  0x70   :  { %p470_p1 = por %p469_p0, %p468_p13 }
  0x72   :  { %p471_p2 = pnand %p470_p1, %p464_p12 }
  0x74   :  { %474 = shalt.err (!%p471_p2)  }
  0x75   :  { %98 = dma.hbm_to_vmem [thread:$0]  %s85_s22, 16, %s96_s17, [#allocation3 + $0x3] }
  0x76   :  { %s317_s13 = sld [smem:[#allocation5 + $0x4]]  ;;  %s622_s28 = smov [#allocation2 + $0x4]  }
  0x77   :  { %s112_s30 = sshll.u32 %s622_s28, 4  ;;  %s746_s0 = sld [smem:[#allocation5 + $0x5]]  ;;  %s113_s30 = int_to_ptr.vmem [resolvable:$true] %s112_s30 }
  0x78   :  { %s623_s4 = smov [#allocation2 + $0x5]   ;;  %s748_s6 = sld [smem:[#allocation5 + $0x6]] }
  0x79   :  { %s129_s5 = sshll.u32 %s623_s4, 4  ;;  %s624_s7 = smov [#allocation2 + $0x6]   ;;  %s750_s5 = int_to_ptr.vmem [resolvable:$true] %s129_s5 }
  0x7a   :  { %s146_s9 = sshll.u32 %s624_s7, 4  ;;  %s752_s10 = sld [smem:[#allocation5 + $0x7]]  ;;  %s754_s9 = int_to_ptr.vmem [resolvable:$true] %s146_s9 }
  0x7c   :  { %s318_s12 = sshll.u32 %s317_s13, 4 }
  0x7d   :  { %s102_s15 = scalar_lea.hbm %s819_s2, %s318_s12  ;;  %s320_s16 = sshll.u32 %s746_s0, 4 }
  0x7e   :  { %s475_s18 = scalar_lea.hbm %s102_s15, 16  ;;  %p478_p4 = scmp.lt.u32.totalorder %s102_s15, %s819_s2 }
  0x7f   :  { %p476_p3 = scmp.ne.s32.totalorder %s102_s15, %s475_s18  ;;  %p479_p5 = scmp.lt.u32.totalorder %s693_s25, %s475_s18 }
  0x80   :  { %p481_p7 = scmp.lt.u32.totalorder %s475_s18, %s102_s15 }
  0x81   :  { %p480_p6 = por %p479_p5, %p478_p4 }
  0x83   :  { %p482_p8 = por %p481_p7, %p480_p6 }
  0x85   :  { %p483_p9 = pnand %p482_p8, %p476_p3 }
  0x87   :  { %486 = shalt.err (!%p483_p9)  }
  0x88   :  { %s487_s11 = scalar_lea.vmem %s113_s30, 16  ;;  %p492_p11 = scmp.lt.s32.totalorder %s113_s30, %s672_s8 }
  0x89   :  { %p488_p10 = scmp.ne.s32.totalorder %s113_s30, %s487_s11  ;;  %p493_p12 = scmp.lt.s32.totalorder %s702_s29, %s487_s11 }
  0x8b   :  { %p494_p13 = por %p493_p12, %p492_p11 }
  0x8d   :  { %p495_p0 = pnand %p494_p13, %p488_p10 }
  0x8f   :  { %498 = shalt.err (!%p495_p0)  }
  0x90   :  { %115 = dma.hbm_to_vmem [thread:$0]  %s102_s15, 16, %s113_s30, [#allocation3 + $0x4] }
  0x91   :  { %s119_s22 = scalar_lea.hbm %s819_s2, %s320_s16  ;;  %s322_s23 = sshll.u32 %s748_s6, 4 }
  0x92   :  { %s499_s24 = scalar_lea.hbm %s119_s22, 16  ;;  %p502_p2 = scmp.lt.u32.totalorder %s119_s22, %s819_s2 }
  0x93   :  { %p500_p1 = scmp.ne.s32.totalorder %s119_s22, %s499_s24  ;;  %p503_p3 = scmp.lt.u32.totalorder %s693_s25, %s499_s24 }
  0x94   :  { %p505_p5 = scmp.lt.u32.totalorder %s499_s24, %s119_s22 }
  0x95   :  { %p504_p4 = por %p503_p3, %p502_p2 }
  0x97   :  { %p506_p6 = por %p505_p5, %p504_p4 }
  0x99   :  { %p507_p7 = pnand %p506_p6, %p500_p1 }
  0x9b   :  { %510 = shalt.err (!%p507_p7)  }
  0x9c   :  { %s511_s13 = scalar_lea.vmem %s750_s5, 16  ;;  %p516_p9 = scmp.lt.s32.totalorder %s750_s5, %s672_s8 }
  0x9d   :  { %p512_p8 = scmp.ne.s32.totalorder %s750_s5, %s511_s13  ;;  %p517_p10 = scmp.lt.s32.totalorder %s702_s29, %s511_s13 }
  0x9f   :  { %p518_p11 = por %p517_p10, %p516_p9 }
  0xa1   :  { %p519_p12 = pnand %p518_p11, %p512_p8 }
  0xa3   :  { %522 = shalt.err (!%p519_p12)  }
  0xa4   :  { %132 = dma.hbm_to_vmem [thread:$0]  %s119_s22, 16, %s750_s5, [#allocation3 + $0x5] }
  0xa5   :  { %s136_s0 = scalar_lea.hbm %s819_s2, %s322_s23  ;;  %s324_s4 = sshll.u32 %s752_s10, 4 }
  0xa6   :  { %s523_s6 = scalar_lea.hbm %s136_s0, 16  ;;  %p526_p0 = scmp.lt.u32.totalorder %s136_s0, %s819_s2 }
  0xa7   :  { %p524_p13 = scmp.ne.s32.totalorder %s136_s0, %s523_s6  ;;  %p527_p1 = scmp.lt.u32.totalorder %s693_s25, %s523_s6 }
  0xa8   :  { %p529_p3 = scmp.lt.u32.totalorder %s523_s6, %s136_s0 }
  0xa9   :  { %p528_p2 = por %p527_p1, %p526_p0 }
  0xab   :  { %p530_p4 = por %p529_p3, %p528_p2 }
  0xad   :  { %p531_p5 = pnand %p530_p4, %p524_p13 }
  0xaf   :  { %534 = shalt.err (!%p531_p5)  }
  0xb0   :  { %s535_s5 = scalar_lea.vmem %s754_s9, 16  ;;  %p540_p7 = scmp.lt.s32.totalorder %s754_s9, %s672_s8 }
  0xb1   :  { %p536_p6 = scmp.ne.s32.totalorder %s754_s9, %s535_s5  ;;  %p541_p8 = scmp.lt.s32.totalorder %s702_s29, %s535_s5 }
  0xb3   :  { %p542_p9 = por %p541_p8, %p540_p7 }
  0xb5   :  { %p543_p10 = pnand %p542_p9, %p536_p6 }
  0xb7   :  { %546 = shalt.err (!%p543_p10)  }
  0xb8   :  { %149 = dma.hbm_to_vmem [thread:$0]  %s136_s0, 16, %s754_s9, [#allocation3 + $0x6] }
  0xb9   :  { %s153_s1 = scalar_lea.hbm %s819_s2, %s324_s4  ;;  %s625_s15 = smov [#allocation2 + $0x7]  }
  0xba   :  { %s163_s16 = sshll.u32 %s625_s15, 4  ;;  %s547_s18 = scalar_lea.hbm %s153_s1, 16  ;;  %s164_s16 = int_to_ptr.vmem [resolvable:$true] %s163_s16 }
  0xbb   :  { %p548_p11 = scmp.ne.s32.totalorder %s153_s1, %s547_s18  ;;  %p550_p12 = scmp.lt.u32.totalorder %s153_s1, %s819_s2 }
  0xbc   :  { %p551_p13 = scmp.lt.u32.totalorder %s693_s25, %s547_s18  ;;  %p553_p1 = scmp.lt.u32.totalorder %s547_s18, %s153_s1 }
  0xbe   :  { %p552_p0 = por %p551_p13, %p550_p12 }
  0xc0   :  { %p554_p2 = por %p553_p1, %p552_p0 }
  0xc2   :  { %p555_p3 = pnand %p554_p2, %p548_p11 }
  0xc4   :  { %558 = shalt.err (!%p555_p3)  }
  0xc5   :  { %s559_s9 = scalar_lea.vmem %s164_s16, 16  ;;  %p564_p5 = scmp.lt.s32.totalorder %s164_s16, %s672_s8 }
  0xc6   :  { %p560_p4 = scmp.ne.s32.totalorder %s164_s16, %s559_s9  ;;  %p565_p6 = scmp.lt.s32.totalorder %s702_s29, %s559_s9 }
  0xc8   :  { %p566_p7 = por %p565_p6, %p564_p5 }
  0xca   :  { %p567_p8 = pnand %p566_p7, %p560_p4 }
  0xcc   :  { %570 = shalt.err (!%p567_p8)  }
  0xcd   :  { %166 = dma.hbm_to_vmem [thread:$0]  %s153_s1, 16, %s164_s16, [#allocation3 + $0x7] }
  0xce   :  { %597 = dma.done.wait [#allocation3], 16 }
  0xcf   :  { %598 = vsyncadd [#allocation3], 4294967280 }
  0xd0   :  { %599 = dma.done.wait [#allocation3 + $0x1], 16 }
  0xd1   :  { %600 = vsyncadd [#allocation3 + $0x1], 4294967280 }
  0xd2   :  { %601 = dma.done.wait [#allocation3 + $0x2], 16 }
  0xd3   :  { %602 = vsyncadd [#allocation3 + $0x2], 4294967280 }
  0xd4   :  { %603 = dma.done.wait [#allocation3 + $0x3], 16 }
  0xd5   :  { %604 = vsyncadd [#allocation3 + $0x3], 4294967280 }
  0xd6   :  { %605 = dma.done.wait [#allocation3 + $0x4], 16 }
  0xd7   :  { %606 = vsyncadd [#allocation3 + $0x4], 4294967280 }
  0xd8   :  { %607 = dma.done.wait [#allocation3 + $0x5], 16 }
  0xd9   :  { %608 = vsyncadd [#allocation3 + $0x5], 4294967280 }
  0xda   :  { %609 = dma.done.wait [#allocation3 + $0x6], 16 }
  0xdb   :  { %610 = vsyncadd [#allocation3 + $0x6], 4294967280 }
  0xdc   :  { %611 = dma.done.wait [#allocation3 + $0x7], 16 }
  0xdd   :  { %612 = vsyncadd [#allocation3 + $0x7], 4294967280  ;;  %v184_v1 = vld [vmem:[#allocation6] sm:$0xff]  ;;  %v185_v2 = vld [vmem:[#allocation2] sm:$0xff]  ;;  %vm188_vm1 = vcmask 261120   ;;  %vm201_vm2 = vcmask 7168  }
  0xde   :  { %v186_v3 = vsub.f32 %v184_v1, %v185_v2  ;;  %v200_v17 = vld [vmem:[#allocation9] sm:$0x1]  ;;  %s626_s8 = smov [#allocation9]  }
  0xdf   :  { %s230_s25 = sshll.u32 %s626_s8, 4  ;;  %s231_s25 = int_to_ptr.vmem [resolvable:$true] %s230_s25 }
  0xe0   :  { %v187_v4 = vmul.f32 %v186_v3, %v186_v3  ;;  %s571_s29 = scalar_lea.vmem %s231_s25, 16  ;;  %s575_s11 = scalar_lea.vmem %s231_s25, 32 }
  0xe1   :  { %p572_p9 = scmp.ne.s32.totalorder %s231_s25, %s571_s29  ;;  %p576_p10 = scmp.lt.s32.totalorder %s231_s25, %s231_s25 }
  0xe2   :  { %v189_v5 = vsel %vm188_vm1, %v187_v4, 0.0  ;;  %p577_p11 = scmp.lt.s32.totalorder %s575_s11, %s571_s29 }
  0xe3   :  { %190 = vadd.xlane.f32.xlu0 %v189_v5 }
  0xe4   :  { %p578_p12 = por %p577_p11, %p576_p10 }
  0xe6   :  { %p579_p13 = pnand %p578_p12, %p572_p9 }
 0x170   :  { %v191_v6 = vpop.xlane.xlu0 %190 }
 0x171   :  { %v192_v7 = vmax.f32 %v191_v6, 1e-12 }
 0x173   :  { %v193_v8 = vmin.f32 %v192_v7, 1e+12 }
 0x175   :  { %v202_v9 = vsel %vm201_vm2, %v193_v8, 0.0 }
 0x176   :  { %203 = vadd.xlane.f32.xlu0 %v202_v9 }
 0x203   :  { %v204_v10 = vpop.xlane.xlu0 %203 }
 0x204   :  { %v205_v11 = vrot.slane %v204_v10, 4 }
 0x206   :  { %v206_v12 = vadd.f32 %v205_v11, %v204_v10 }
 0x208   :  { %v207_v13 = vrot.slane %v206_v12, 2 }
 0x20a   :  { %v208_v14 = vadd.f32 %v207_v13, %v206_v12 }
 0x20c   :  { %v209_v15 = vrot.slane %v208_v14, 1 }
 0x20e   :  { %v210_v16 = vadd.f32 %v209_v15, %v208_v14 }
 0x210   :  { %333 = vpush %v210_v16 }
 0x241   :  { %s334_s2 = spop %333 }
 0x242   :  { %v212_v18 = vstv %s334_s2 }
 0x243   :  { %v213_v19 = vadd.f32 %v212_v18, %v200_v17 }
 0x245   :  { %215 = vst.msk [vmem:[#allocation9] sm:$0x1] %vm32_vm0, %v213_v19 }
 0x24c   :  { %v219_v20 = vld [vmem:[#allocation9] sm:$0x1] }
 0x24d   :  { %v221_v21 = vmul.f32 0.0625, %v219_v20 }
 0x24f   :  { %v222_v22 = vadd.f32 7.5e-12, %v221_v21 }
 0x251   :  { %223 = vst.msk [vmem:[#allocation9] sm:$0x1] %vm32_vm0, %v222_v22 }
 0x252   :  { %582 = shalt.err (!%p579_p13)
}
 0x253   :  { %s583_s22 = scalar_lea.hbm %s820_s3, 16 }
 0x254   :  { %p584_p0 = scmp.ne.s32.totalorder %s820_s3, %s583_s22  ;;  %p587_p1 = scmp.lt.u32.totalorder %s583_s22, %s820_s3 }
 0x256   :  { %p589_p2 = pnand %p587_p1, %p584_p0 }
 0x258   :  { %592 = shalt.err (!%p589_p2)
}
 0x259   :  { %233 = dma.vmem_to_hbm [thread:$0]  %s231_s25, 16, %s820_s3, [#allocation8]  }
 0x25a   :  { %613 = dma.done.wait [#allocation8], 16  }
 0x25b   :  { %614 = vsyncadd [#allocation8], 4294967280 }
 0x25c   :  { %237 = vsyncpa [#allocation7], 1 }
 0x25d   :  { %238 = vsyncpa [#allocation8], 1 }
 0x25e   :  { %239 = vsyncmov [#allocation3] }
 0x261   :  { %s240_s30 = vpop.sfrf %239 }
 0x262   :  { %p325_p3 = scmp.ne.s32.totalorder %s240_s30, 0 }
 0x264   :  { %244 = shalt.err (%p325_p3)  }
 0x265   :  { %246 = vsyncmov [#allocation3 + $0x1] }
 0x268   :  { %s247_s0 = vpop.sfrf %246 }
 0x269   :  { %p326_p4 = scmp.ne.s32.totalorder %s247_s0, 0 }
 0x26b   :  { %251 = shalt.err (%p326_p4)  }
 0x26c   :  { %253 = vsyncmov [#allocation3 + $0x2] }
 0x26f   :  { %s254_s4 = vpop.sfrf %253 }
 0x270   :  { %p327_p5 = scmp.ne.s32.totalorder %s254_s4, 0 }
 0x272   :  { %258 = shalt.err (%p327_p5)  }
 0x273   :  { %260 = vsyncmov [#allocation3 + $0x3] }
 0x276   :  { %s261_s6 = vpop.sfrf %260 }
 0x277   :  { %p328_p6 = scmp.ne.s32.totalorder %s261_s6, 0 }
 0x279   :  { %265 = shalt.err (%p328_p6)  }
 0x27a   :  { %267 = vsyncmov [#allocation3 + $0x4] }
 0x27d   :  { %s268_s3 = vpop.sfrf %267 }
 0x27e   :  { %p329_p7 = scmp.ne.s32.totalorder %s268_s3, 0 }
 0x280   :  { %272 = shalt.err (%p329_p7)  }
 0x281   :  { %274 = vsyncmov [#allocation3 + $0x5] }
 0x284   :  { %s275_s7 = vpop.sfrf %274 }
 0x285   :  { %p330_p8 = scmp.ne.s32.totalorder %s275_s7, 0 }
 0x287   :  { %279 = shalt.err (%p330_p8)  }
 0x288   :  { %281 = vsyncmov [#allocation3 + $0x6] }
 0x28b   :  { %s282_s12 = vpop.sfrf %281 }
 0x28c   :  { %p331_p9 = scmp.ne.s32.totalorder %s282_s12, 0 }
 0x28e   :  { %286 = shalt.err (%p331_p9)  }
 0x28f   :  { %288 = vsyncmov [#allocation3 + $0x7] }
 0x292   :  { %s289_s5 = vpop.sfrf %288 }
 0x293   :  { %p332_p10 = scmp.ne.s32.totalorder %s289_s5, 0 }
 0x295   :  { %293 = shalt.err (%p332_p10)  }

</bundles_post_ra>
